<compile_context>
chip_gen: v6e
topology: v6e:2x2x1
jax: 0.10.0
libtpu: 0.0.40
codegen_flags: <defaults>
</compile_context>

<pallas_src>
import functools

import jax
import jax.numpy as jnp
from jax.experimental import pallas as pl
from jax.experimental.pallas import tpu as pltpu

NPAD = 128                  # classifier logits padded to a full lane width
IO_DTYPE = jnp.float32      # set jnp.bfloat16 on v6e/v7x to halve x/se HBM traffic


# ----------------------------- activations ---------------------------------
def _hardswish(x):
    # PyTorch nn.Hardswish: x * relu6(x + 3) / 6
    return x * jnp.clip(x + 3.0, 0.0, 6.0) * (1.0 / 6.0)


def _hardsigmoid(x):
    # PyTorch nn.Hardsigmoid: relu6(x + 3) / 6
    return jnp.clip(x + 3.0, 0.0, 6.0) * (1.0 / 6.0)


# -------------------- fused SE -> avg-pool -> classifier --------------------
def _fused_kernel(x_ref, mask_ref, w1_ref, b1_ref, w2_ref, b2_ref,
                  wct_ref, bcp_ref, se_ref, logits_ref):
    """One image per grid step.

    x_ref     : (C, HW)  quadrant-contiguous spatial layout
                (lanes [q*QA, (q+1)*QA) hold quadrant q, QA = HW/4)
    mask_ref  : (4, HW)  quadrant one-hot in the same permuted layout
    w1_ref    : (R, C), b1_ref: (R, 1)      1x1 conv C->R
    w2_ref    : (C, R), b2_ref: (C, 1)      1x1 conv R->C
    wct_ref   : (C, NPAD), bcp_ref: (1, NPAD)  lane-padded classifier
    se_ref    : (C, HW)  out (permuted layout)
    logits_ref: (1, NPAD) out
    """
    C, HW = x_ref.shape
    QA = HW // 4

    x2 = x_ref[...].astype(jnp.float32)                               # (C, HW)

    # quadrant avg/max pools: static 64-lane segment reductions (XLU slot),
    # no masked full-width where passes.
    avg_cols, max_cols = [], []
    for q in range(4):                                # static, unrolled at trace
        seg = x2[:, q * QA:(q + 1) * QA]                              # (C, QA)
        avg_cols.append(jnp.sum(seg, axis=1, keepdims=True) * (1.0 / QA))
        max_cols.append(jnp.max(seg, axis=1, keepdims=True))
    avg = jnp.concatenate(avg_cols, axis=1)                           # (C, 4)
    mx = jnp.concatenate(max_cols, axis=1)                            # (C, 4)

    # avg | max stacked on the free axis -> one shared fc pass handles both
    # branches (per-branch biases correctly counted, like torch avg_out+max_out)
    pooled = jnp.concatenate([avg, mx], axis=1)                       # (C, 8)
    h = _hardswish(jnp.dot(w1_ref[...], pooled,
                           preferred_element_type=jnp.float32)
                   + b1_ref[...])                                     # (R, 8)
    o = (jnp.dot(w2_ref[...], h, preferred_element_type=jnp.float32)
         + b2_ref[...])                                               # (C, 8)
    # fold avg-branch + max-branch: a 4-lane VPU add (no padded MXU matmul)
    scale = _hardsigmoid(o[:, 0:4] + o[:, 4:8])                       # (C, 4)

    # broadcast the per-quadrant scale to the full spatial map via MXU and
    # apply: ONE full-width unmasked (C, HW) store per image.
    smap = jnp.dot(scale, mask_ref[...],
                   preferred_element_type=jnp.float32)                # (C, HW)
    se_ref[...] = (x2 * smap).astype(se_ref.dtype)

    # global average pool, algebraically (exact for equal-area quadrants):
    # mean_p se[c, p] = 0.25 * sum_q scale[c, q] * avg[c, q]
    feats = 0.25 * jnp.sum(scale * avg, axis=1, keepdims=True)        # (C, 1)

    # lane-dense classifier: (C,1) feats broadcast against the (C, NPAD)
    # weight, sublane-reduced to a (1, NPAD) logits row — no transposes,
    # no lane-sparse stores.
    logits_ref[...] = (jnp.sum(feats * wct_ref[...], axis=0, keepdims=True)
                       + bcp_ref[...])                                # (1, NPAD)


# ----------------------------- layout helpers -------------------------------
def _to_quadrant_major(x_nchw):
    """(B,C,H,W) -> (B,C,H*W), quadrants contiguous in order TL, TR, BL, BR."""
    B, C, H, W = x_nchw.shape
    h2, v2 = H // 2, W // 2
    return (x_nchw.reshape(B, C, 2, h2, 2, v2)
            .transpose(0, 1, 2, 4, 3, 5)
            .reshape(B, C, H * W))


def _from_quadrant_major(x_q, H, W):
    """Inverse of _to_quadrant_major."""
    B, C, _ = x_q.shape
    h2, v2 = H // 2, W // 2
    return (x_q.reshape(B, C, 2, 2, h2, v2)
            .transpose(0, 1, 2, 4, 3, 5)
            .reshape(B, C, H, W))


# --------------------------------- wrapper -----------------------------------
@functools.partial(jax.jit, static_argnames=("num_classes",))
def fused_quadrant_se_head(x_nchw, w1, b1, w2, b2, wc, bc, *, num_classes):
    """x_nchw (B,C,H,W) -> (se_out (B,C,H,W), logits (B,num_classes))."""
    B, C, H, W = x_nchw.shape
    if H % 2 or W % 2:
        # TODO(synk): odd H/W needs PyTorch's overlapping ceil-mode adaptive
        # pooling regions; only the even case is implemented here.
        raise ValueError("QuadrantSE Pallas kernel requires even H and W")
    if num_classes > NPAD:
        raise ValueError("num_classes must be <= 128")
    HW = H * W
    QA = HW // 4
    R = w1.shape[0]

    # one-time quadrant-contiguous spatial permutation (tiny XLA transpose)
    x_q = _to_quadrant_major(x_nchw).astype(IO_DTYPE)                 # (B,C,HW)

    # quadrant membership in the permuted layout: lanes [q*QA,(q+1)*QA) = q
    mask = (jnp.arange(HW, dtype=jnp.int32)[None, :] // QA
            == jnp.arange(4, dtype=jnp.int32)[:, None]).astype(jnp.float32)

    # classifier in lane-dense (C, NPAD) layout
    wct = jnp.zeros((C, NPAD), jnp.float32).at[:, :num_classes].set(
        wc.astype(jnp.float32).T)
    bcp = jnp.zeros((1, NPAD), jnp.float32).at[0, :num_classes].set(
        bc.astype(jnp.float32))

    w1f = w1.astype(jnp.float32)
    b1f = b1.astype(jnp.float32).reshape(R, 1)
    w2f = w2.astype(jnp.float32)
    b2f = b2.astype(jnp.float32).reshape(C, 1)

    se_q, logits3 = pl.pallas_call(
        _fused_kernel,
        out_shape=(jax.ShapeDtypeStruct((B, C, HW), IO_DTYPE),
                   jax.ShapeDtypeStruct((B, 1, NPAD), jnp.float32)),
        grid_spec=pltpu.PrefetchScalarGridSpec(
            num_scalar_prefetch=0,
            grid=(B,),                                    # one image per step
            in_specs=[
                pl.BlockSpec((None, C, HW), lambda b: (b, 0, 0)),    # x
                pl.BlockSpec((4, HW), lambda b: (0, 0)),             # mask
                pl.BlockSpec((R, C), lambda b: (0, 0)),              # w1
                pl.BlockSpec((R, 1), lambda b: (0, 0)),              # b1
                pl.BlockSpec((C, R), lambda b: (0, 0)),              # w2
                pl.BlockSpec((C, 1), lambda b: (0, 0)),              # b2
                pl.BlockSpec((C, NPAD), lambda b: (0, 0)),           # wct
                pl.BlockSpec((1, NPAD), lambda b: (0, 0)),           # bcp
            ],
            out_specs=[
                pl.BlockSpec((None, C, HW), lambda b: (b, 0, 0)),    # se
                pl.BlockSpec((None, 1, NPAD), lambda b: (b, 0, 0)),  # logits row
            ],
        ),
        # TODO(synk): for realistic EfficientNet shapes on v7x (64 MiB VMEM),
        # additionally grid over C and set vmem_limit_bytes explicitly.
        compiler_params=pltpu.CompilerParams(
            dimension_semantics=("parallel",)),
    )(x_q, mask, w1f, b1f, w2f, b2f, wct, bcp)

    se_out = _from_quadrant_major(se_q, H, W)
    logits = logits3[:, 0, :num_classes]
    return se_out, logits


# ------------------------- plain-JAX reference ------------------------------
def _ref_forward(x, w1, b1, w2, b2, wc, bc):
    B, C, H, W = x.shape
    h2, v2 = H // 2, W // 2
    quads = [x[:, :, :h2, :v2], x[:, :, :h2, v2:],
             x[:, :, h2:, :v2], x[:, :, h2:, v2:]]
    avg = jnp.stack([q.mean(axis=(2, 3)) for q in quads], axis=-1)   # (B,C,4)
    mx = jnp.stack([q.max(axis=(2, 3)) for q in quads], axis=-1)     # (B,C,4)

    def fc(p):
        h = jnp.einsum('rc,bcq->brq', w1, p) + b1.reshape(1, -1, 1)
        h = _hardswish(h)
        return jnp.einsum('cr,brq->bcq', w2, h) + b2.reshape(1, -1, 1)

    s = _hardsigmoid(fc(avg) + fc(mx))                               # (B,C,4)
    se_top = jnp.concatenate([quads[0] * s[:, :, 0][:, :, None, None],
                              quads[1] * s[:, :, 1][:, :, None, None]], axis=3)
    se_bot = jnp.concatenate([quads[2] * s[:, :, 2][:, :, None, None],
                              quads[3] * s[:, :, 3][:, :, None, None]], axis=3)
    se = jnp.concatenate([se_top, se_bot], axis=2)
    feats = se.mean(axis=(2, 3))
    logits = feats @ wc.T + bc
    return se, logits


# ---------------------------------- main -------------------------------------
if __name__ == "__main__":
    key = jax.random.PRNGKey(0)
    kx, k1, k2, k3, k4, k5, k6 = jax.random.split(key, 7)

    B, C, H, W = 2, 32, 16, 16          # features[1][0].block[1]: SE(32, 8)
    R = 8                               # reduction dim
    NUM_CLASSES = 10

    x = jax.random.normal(kx, (B, C, H, W), dtype=jnp.float32)

    # 1x1-conv weights in torch layout (squeezed): C->R then R->C
    w1 = 0.1 * jax.random.normal(k1, (R, C), dtype=jnp.float32)
    b1 = 0.1 * jax.random.normal(k2, (R, 1), dtype=jnp.float32)
    w2 = 0.1 * jax.random.normal(k3, (C, R), dtype=jnp.float32)
    b2 = 0.1 * jax.random.normal(k4, (C, 1), dtype=jnp.float32)

    # classifier in torch nn.Linear layout: weight (N, C), bias (N,)
    wc = 0.1 * jax.random.normal(k5, (NUM_CLASSES, C), dtype=jnp.float32)
    bc = 0.1 * jax.random.normal(k6, (NUM_CLASSES,), dtype=jnp.float32)

    se_out, logits = fused_quadrant_se_head(x, w1, b1, w2, b2, wc, bc,
                                            num_classes=NUM_CLASSES)
    se_out, logits = jax.block_until_ready((se_out, logits))

    # correctness check against a plain-JAX reference
    se_ref, logits_ref = _ref_forward(x, w1, b1, w2, b2, wc, bc)
    assert se_out.shape == (B, C, H, W)
    assert logits.shape == (B, NUM_CLASSES)
    assert jnp.allclose(se_out.astype(jnp.float32), se_ref,
                        atol=1e-2, rtol=1e-2), "SE mismatch"
    assert jnp.allclose(logits, logits_ref, atol=1e-2, rtol=1e-2), "logits mismatch"

    print("KERNEL_OK")
</pallas_src>

<mosaic_0001>
module attributes {stable_mosaic.version = 11 : i64} {
  func.func @_fused_kernel(%arg0: i32, %arg1: memref<1x32x256xf32, #tpu.memory_space<vmem>>, %arg2: memref<4x256xf32, #tpu.memory_space<vmem>>, %arg3: memref<8x32xf32, #tpu.memory_space<vmem>>, %arg4: memref<8x1xf32, #tpu.memory_space<vmem>>, %arg5: memref<32x8xf32, #tpu.memory_space<vmem>>, %arg6: memref<32x1xf32, #tpu.memory_space<vmem>>, %arg7: memref<32x128xf32, #tpu.memory_space<vmem>>, %arg8: memref<1x128xf32, #tpu.memory_space<vmem>>, %arg9: memref<1x32x256xf32, #tpu.memory_space<vmem>>, %arg10: memref<1x1x128xf32, #tpu.memory_space<vmem>>) attributes {dimension_semantics = [#tpu.dimension_semantics<parallel>], iteration_bounds = array<i64: 2>, scalar_prefetch = 0 : i64, scratch_operands = 0 : i64, tpu.core_type = #tpu.core_type<tc>, window_params = [{transform_indices = @transform_0, window_bounds = array<i64: 1, 32, 256>}, {pipeline_mode = #tpu.pipeline_mode<synchronous>, transform_indices = @transform_1, window_bounds = array<i64: 4, 256>}, {pipeline_mode = #tpu.pipeline_mode<synchronous>, transform_indices = @transform_2, window_bounds = array<i64: 8, 32>}, {pipeline_mode = #tpu.pipeline_mode<synchronous>, transform_indices = @transform_3, window_bounds = array<i64: 8, 1>}, {pipeline_mode = #tpu.pipeline_mode<synchronous>, transform_indices = @transform_4, window_bounds = array<i64: 32, 8>}, {pipeline_mode = #tpu.pipeline_mode<synchronous>, transform_indices = @transform_5, window_bounds = array<i64: 32, 1>}, {pipeline_mode = #tpu.pipeline_mode<synchronous>, transform_indices = @transform_6, window_bounds = array<i64: 32, 128>}, {pipeline_mode = #tpu.pipeline_mode<synchronous>, transform_indices = @transform_7, window_bounds = array<i64: 1, 128>}, {transform_indices = @transform_8, window_bounds = array<i64: 1, 32, 256>}, {transform_indices = @transform_9, window_bounds = array<i64: 1, 1, 128>}]} {
    %c0 = arith.constant 0 : index
    %c0_0 = arith.constant 0 : index
    %c0_1 = arith.constant 0 : index
    %0 = vector.load %arg1[%c0, %c0_0, %c0_1] : memref<1x32x256xf32, #tpu.memory_space<vmem>>, vector<1x32x256xf32>
    %1 = vector.shape_cast %0 : vector<1x32x256xf32> to vector<32x256xf32>
    %2 = vector.extract_strided_slice %1 {offsets = [0, 0], sizes = [32, 64], strides = [1, 1]} : vector<32x256xf32> to vector<32x64xf32>
    %cst = arith.constant dense<0.000000e+00> : vector<32xf32>
    %3 = vector.multi_reduction <add>, %2, %cst [1] : vector<32x64xf32> to vector<32xf32>
    %4 = vector.shape_cast %3 : vector<32xf32> to vector<32x1xf32>
    %cst_2 = arith.constant 1.562500e-02 : f32
    %5 = vector.broadcast %cst_2 : f32 to vector<32x1xf32>
    %6 = arith.mulf %4, %5 : vector<32x1xf32>
    %cst_3 = arith.constant dense<0xFF800000> : vector<32xf32>
    %7 = vector.multi_reduction <maximumf>, %2, %cst_3 [1] : vector<32x64xf32> to vector<32xf32>
    %8 = vector.shape_cast %7 : vector<32xf32> to vector<32x1xf32>
    %9 = vector.extract_strided_slice %1 {offsets = [0, 64], sizes = [32, 64], strides = [1, 1]} : vector<32x256xf32> to vector<32x64xf32>
    %cst_4 = arith.constant dense<0.000000e+00> : vector<32xf32>
    %10 = vector.multi_reduction <add>, %9, %cst_4 [1] : vector<32x64xf32> to vector<32xf32>
    %11 = vector.shape_cast %10 : vector<32xf32> to vector<32x1xf32>
    %cst_5 = arith.constant 1.562500e-02 : f32
    %12 = vector.broadcast %cst_5 : f32 to vector<32x1xf32>
    %13 = arith.mulf %11, %12 : vector<32x1xf32>
    %cst_6 = arith.constant dense<0xFF800000> : vector<32xf32>
    %14 = vector.multi_reduction <maximumf>, %9, %cst_6 [1] : vector<32x64xf32> to vector<32xf32>
    %15 = vector.shape_cast %14 : vector<32xf32> to vector<32x1xf32>
    %16 = vector.extract_strided_slice %1 {offsets = [0, 128], sizes = [32, 64], strides = [1, 1]} : vector<32x256xf32> to vector<32x64xf32>
    %cst_7 = arith.constant dense<0.000000e+00> : vector<32xf32>
    %17 = vector.multi_reduction <add>, %16, %cst_7 [1] : vector<32x64xf32> to vector<32xf32>
    %18 = vector.shape_cast %17 : vector<32xf32> to vector<32x1xf32>
    %cst_8 = arith.constant 1.562500e-02 : f32
    %19 = vector.broadcast %cst_8 : f32 to vector<32x1xf32>
    %20 = arith.mulf %18, %19 : vector<32x1xf32>
    %cst_9 = arith.constant dense<0xFF800000> : vector<32xf32>
    %21 = vector.multi_reduction <maximumf>, %16, %cst_9 [1] : vector<32x64xf32> to vector<32xf32>
    %22 = vector.shape_cast %21 : vector<32xf32> to vector<32x1xf32>
    %23 = vector.extract_strided_slice %1 {offsets = [0, 192], sizes = [32, 64], strides = [1, 1]} : vector<32x256xf32> to vector<32x64xf32>
    %cst_10 = arith.constant dense<0.000000e+00> : vector<32xf32>
    %24 = vector.multi_reduction <add>, %23, %cst_10 [1] : vector<32x64xf32> to vector<32xf32>
    %25 = vector.shape_cast %24 : vector<32xf32> to vector<32x1xf32>
    %cst_11 = arith.constant 1.562500e-02 : f32
    %26 = vector.broadcast %cst_11 : f32 to vector<32x1xf32>
    %27 = arith.mulf %25, %26 : vector<32x1xf32>
    %cst_12 = arith.constant dense<0xFF800000> : vector<32xf32>
    %28 = vector.multi_reduction <maximumf>, %23, %cst_12 [1] : vector<32x64xf32> to vector<32xf32>
    %29 = vector.shape_cast %28 : vector<32xf32> to vector<32x1xf32>
    %30 = tpu.concatenate %6, %13, %20, %27 in 1 : vector<32x1xf32>, vector<32x1xf32>, vector<32x1xf32>, vector<32x1xf32> -> vector<32x4xf32>
    %31 = tpu.concatenate %8, %15, %22, %29 in 1 : vector<32x1xf32>, vector<32x1xf32>, vector<32x1xf32>, vector<32x1xf32> -> vector<32x4xf32>
    %32 = tpu.concatenate %30, %31 in 1 : vector<32x4xf32>, vector<32x4xf32> -> vector<32x8xf32>
    %c0_13 = arith.constant 0 : index
    %c0_14 = arith.constant 0 : index
    %33 = vector.load %arg3[%c0_13, %c0_14] : memref<8x32xf32, #tpu.memory_space<vmem>>, vector<8x32xf32>
    %cst_15 = arith.constant dense<0.000000e+00> : vector<8x8xf32>
    %34 = tpu.matmul %33, %32, %cst_15 {dimension_numbers = #tpu.dot_dimension_numbers<[1], [0], [0], [1], [0, 0, 1, 1], [], []>} : vector<8x32xf32>, vector<32x8xf32>, vector<8x8xf32> -> vector<8x8xf32>
    %c0_16 = arith.constant 0 : index
    %c0_17 = arith.constant 0 : index
    %35 = vector.load %arg4[%c0_16, %c0_17] : memref<8x1xf32, #tpu.memory_space<vmem>>, vector<8x1xf32>
    %36 = vector.broadcast %35 : vector<8x1xf32> to vector<8x8xf32>
    %37 = arith.addf %34, %36 : vector<8x8xf32>
    %cst_18 = arith.constant 3.000000e+00 : f32
    %38 = vector.broadcast %cst_18 : f32 to vector<8x8xf32>
    %39 = arith.addf %37, %38 : vector<8x8xf32>
    %cst_19 = arith.constant 0.000000e+00 : f32
    %cst_20 = arith.constant 6.000000e+00 : f32
    %40 = vector.broadcast %cst_19 : f32 to vector<8x8xf32>
    %41 = arith.maximumf %40, %39 : vector<8x8xf32>
    %42 = vector.broadcast %cst_20 : f32 to vector<8x8xf32>
    %43 = arith.minimumf %42, %41 : vector<8x8xf32>
    %44 = arith.mulf %37, %43 : vector<8x8xf32>
    %cst_21 = arith.constant 0.166666672 : f32
    %45 = vector.broadcast %cst_21 : f32 to vector<8x8xf32>
    %46 = arith.mulf %44, %45 : vector<8x8xf32>
    %c0_22 = arith.constant 0 : index
    %c0_23 = arith.constant 0 : index
    %47 = vector.load %arg5[%c0_22, %c0_23] : memref<32x8xf32, #tpu.memory_space<vmem>>, vector<32x8xf32>
    %cst_24 = arith.constant dense<0.000000e+00> : vector<32x8xf32>
    %48 = tpu.matmul %47, %46, %cst_24 {dimension_numbers = #tpu.dot_dimension_numbers<[1], [0], [0], [1], [0, 0, 1, 1], [], []>} : vector<32x8xf32>, vector<8x8xf32>, vector<32x8xf32> -> vector<32x8xf32>
    %c0_25 = arith.constant 0 : index
    %c0_26 = arith.constant 0 : index
    %49 = vector.load %arg6[%c0_25, %c0_26] : memref<32x1xf32, #tpu.memory_space<vmem>>, vector<32x1xf32>
    %50 = vector.broadcast %49 : vector<32x1xf32> to vector<32x8xf32>
    %51 = arith.addf %48, %50 : vector<32x8xf32>
    %52 = vector.extract_strided_slice %51 {offsets = [0, 0], sizes = [32, 4], strides = [1, 1]} : vector<32x8xf32> to vector<32x4xf32>
    %53 = vector.extract_strided_slice %51 {offsets = [0, 4], sizes = [32, 4], strides = [1, 1]} : vector<32x8xf32> to vector<32x4xf32>
    %54 = arith.addf %52, %53 : vector<32x4xf32>
    %cst_27 = arith.constant 3.000000e+00 : f32
    %55 = vector.broadcast %cst_27 : f32 to vector<32x4xf32>
    %56 = arith.addf %54, %55 : vector<32x4xf32>
    %cst_28 = arith.constant 0.000000e+00 : f32
    %cst_29 = arith.constant 6.000000e+00 : f32
    %57 = vector.broadcast %cst_28 : f32 to vector<32x4xf32>
    %58 = arith.maximumf %57, %56 : vector<32x4xf32>
    %59 = vector.broadcast %cst_29 : f32 to vector<32x4xf32>
    %60 = arith.minimumf %59, %58 : vector<32x4xf32>
    %cst_30 = arith.constant 0.166666672 : f32
    %61 = vector.broadcast %cst_30 : f32 to vector<32x4xf32>
    %62 = arith.mulf %60, %61 : vector<32x4xf32>
    %c0_31 = arith.constant 0 : index
    %c0_32 = arith.constant 0 : index
    %63 = vector.load %arg2[%c0_31, %c0_32] : memref<4x256xf32, #tpu.memory_space<vmem>>, vector<4x256xf32>
    %cst_33 = arith.constant dense<0.000000e+00> : vector<32x256xf32>
    %64 = tpu.matmul %62, %63, %cst_33 {dimension_numbers = #tpu.dot_dimension_numbers<[1], [0], [0], [1], [0, 0, 1, 1], [], []>} : vector<32x4xf32>, vector<4x256xf32>, vector<32x256xf32> -> vector<32x256xf32>
    %65 = arith.mulf %1, %64 : vector<32x256xf32>
    %c0_34 = arith.constant 0 : index
    %c0_35 = arith.constant 0 : index
    %c0_36 = arith.constant 0 : index
    %66 = vector.load %arg9[%c0_34, %c0_35, %c0_36] : memref<1x32x256xf32, #tpu.memory_space<vmem>>, vector<1x32x256xf32>
    %67 = vector.shape_cast %66 : vector<1x32x256xf32> to vector<32x256xf32>
    %68 = vector.shape_cast %65 : vector<32x256xf32> to vector<1x32x256xf32>
    tpu.vector_store %arg9[%c0_34, %c0_35, %c0_36], %68 {strides = array<i32>} : memref<1x32x256xf32, #tpu.memory_space<vmem>>, vector<1x32x256xf32>,
    %69 = arith.mulf %62, %30 : vector<32x4xf32>
    %cst_37 = arith.constant dense<0.000000e+00> : vector<32xf32>
    %70 = vector.multi_reduction <add>, %69, %cst_37 [1] : vector<32x4xf32> to vector<32xf32>
    %71 = vector.shape_cast %70 : vector<32xf32> to vector<32x1xf32>
    %cst_38 = arith.constant 2.500000e-01 : f32
    %72 = vector.broadcast %cst_38 : f32 to vector<32x1xf32>
    %73 = arith.mulf %72, %71 : vector<32x1xf32>
    %c0_39 = arith.constant 0 : index
    %c0_40 = arith.constant 0 : index
    %74 = vector.load %arg7[%c0_39, %c0_40] : memref<32x128xf32, #tpu.memory_space<vmem>>, vector<32x128xf32>
    %75 = vector.broadcast %73 : vector<32x1xf32> to vector<32x128xf32>
    %76 = arith.mulf %75, %74 : vector<32x128xf32>
    %cst_41 = arith.constant dense<0.000000e+00> : vector<128xf32>
    %77 = vector.multi_reduction <add>, %76, %cst_41 [0] : vector<32x128xf32> to vector<128xf32>
    %78 = vector.shape_cast %77 : vector<128xf32> to vector<1x128xf32>
    %c0_42 = arith.constant 0 : index
    %c0_43 = arith.constant 0 : index
    %79 = vector.load %arg8[%c0_42, %c0_43] : memref<1x128xf32, #tpu.memory_space<vmem>>, vector<1x128xf32>
    %80 = arith.addf %78, %79 : vector<1x128xf32>
    %c0_44 = arith.constant 0 : index
    %c0_45 = arith.constant 0 : index
    %c0_46 = arith.constant 0 : index
    %81 = vector.load %arg10[%c0_44, %c0_45, %c0_46] : memref<1x1x128xf32, #tpu.memory_space<vmem>>, vector<1x1x128xf32>
    %82 = vector.shape_cast %81 : vector<1x1x128xf32> to vector<1x128xf32>
    %83 = vector.shape_cast %80 : vector<1x128xf32> to vector<1x1x128xf32>
    tpu.vector_store %arg10[%c0_44, %c0_45, %c0_46], %83 {strides = array<i32>} : memref<1x1x128xf32, #tpu.memory_space<vmem>>, vector<1x1x128xf32>,
    return
  }
  func.func @transform_0(%arg0: i32) -> (i32, i32, i32) {
    %c0_i32 = arith.constant 0 : i32
    %c0_i32_0 = arith.constant 0 : i32
    %c0_i32_1 = arith.constant 0 : i32
    return %arg0, %c0_i32, %c0_i32_0 : i32, i32, i32
  }
  func.func @transform_1(%arg0: i32) -> (i32, i32) {
    %c0_i32 = arith.constant 0 : i32
    %c0_i32_0 = arith.constant 0 : i32
    %c0_i32_1 = arith.constant 0 : i32
    return %c0_i32, %c0_i32_0 : i32, i32
  }
  func.func @transform_2(%arg0: i32) -> (i32, i32) {
    %c0_i32 = arith.constant 0 : i32
    %c0_i32_0 = arith.constant 0 : i32
    %c0_i32_1 = arith.constant 0 : i32
    return %c0_i32, %c0_i32_0 : i32, i32
  }
  func.func @transform_3(%arg0: i32) -> (i32, i32) {
    %c0_i32 = arith.constant 0 : i32
    %c0_i32_0 = arith.constant 0 : i32
    %c0_i32_1 = arith.constant 0 : i32
    return %c0_i32, %c0_i32_0 : i32, i32
  }
  func.func @transform_4(%arg0: i32) -> (i32, i32) {
    %c0_i32 = arith.constant 0 : i32
    %c0_i32_0 = arith.constant 0 : i32
    %c0_i32_1 = arith.constant 0 : i32
    return %c0_i32, %c0_i32_0 : i32, i32
  }
  func.func @transform_5(%arg0: i32) -> (i32, i32) {
    %c0_i32 = arith.constant 0 : i32
    %c0_i32_0 = arith.constant 0 : i32
    %c0_i32_1 = arith.constant 0 : i32
    return %c0_i32, %c0_i32_0 : i32, i32
  }
  func.func @transform_6(%arg0: i32) -> (i32, i32) {
    %c0_i32 = arith.constant 0 : i32
    %c0_i32_0 = arith.constant 0 : i32
    %c0_i32_1 = arith.constant 0 : i32
    return %c0_i32, %c0_i32_0 : i32, i32
  }
  func.func @transform_7(%arg0: i32) -> (i32, i32) {
    %c0_i32 = arith.constant 0 : i32
    %c0_i32_0 = arith.constant 0 : i32
    %c0_i32_1 = arith.constant 0 : i32
    return %c0_i32, %c0_i32_0 : i32, i32
  }
  func.func @transform_8(%arg0: i32) -> (i32, i32, i32) {
    %c0_i32 = arith.constant 0 : i32
    %c0_i32_0 = arith.constant 0 : i32
    %c0_i32_1 = arith.constant 0 : i32
    return %arg0, %c0_i32, %c0_i32_0 : i32, i32, i32
  }
  func.func @transform_9(%arg0: i32) -> (i32, i32, i32) {
    %c0_i32 = arith.constant 0 : i32
    %c0_i32_0 = arith.constant 0 : i32
    %c0_i32_1 = arith.constant 0 : i32
    return %arg0, %c0_i32, %c0_i32_0 : i32, i32, i32
  }
}

</mosaic_0001>

<bundles_post_ra>
// kernel: fused_quadrant_se_head.1
= control target key start
LH: loop header
LB: loop body
LE: loop exit
PB: predicated region body
PF: predicated region fallthrough
CT: control target
= control target key end

     0   :  { %s1599_s0 = inlined_call_operand.vmem [shape: f32[2,32,256], index: 0, kind: input, shape index: {}]   ;;  %s1600_s1 = inlined_call_operand.vmem [shape: f32[4,256], index: 1, kind: input, shape index: {}]   ;;  %s1601_s2 = inlined_call_operand.vmem [shape: f32[8,32], index: 2, kind: input, shape index: {}]   ;;  %s1602_s3 = inlined_call_operand.vmem [shape: f32[8,1], index: 3, kind: input, shape index: {}]   ;;  %s1603_s4 = inlined_call_operand.vmem [shape: f32[32,8], index: 4, kind: input, shape index: {}]   ;;  %s1604_s5 = inlined_call_operand.vmem [shape: f32[32,1], index: 5, kind: input, shape index: {}]   ;;  %s1605_s6 = inlined_call_operand.vmem [shape: f32[32,128], index: 6, kind: input, shape index: {}]   ;;  %s1606_s7 = inlined_call_operand.vmem [shape: f32[1,128], index: 7, kind: input, shape index: {}]   ;;  %s1607_s8 = inlined_call_operand.vmem [shape: f32[2,32,256], index: 8, kind: output, shape index: {0}]   ;;  %s1608_s9 = inlined_call_operand.hbm [shape: f32[2,1,128], index: 9, kind: output, shape index: {1}]  }
   0x1   :  { %1610 = sst [smem:[#allocation5_spill]] %s1599_s0 }
   0x2   :  { %15 = vsyncpa [#allocation3], 0 }
   0x3   :  { %17 = vsyncpa [#allocation3 + $0x1], 0  ;;  %s1279_s30 = smov 0   ;;  %s1281_s10 = smov 0  }
   0x4   :  { %s1283_s11 = smov 0   ;;  %s1285_s12 = smov 0  }
   0x5 LB: > { %s1300_s13 = sadd.s32 4294967295, %s1220_s12   ;;  %s1059_s14 = sadd.s32 4294967294, %s1220_s12   ;;  %s1220_s12 = sphi %s1285_s12, %s1618_s12   ;;  %s1216_s11 = sphi %s1283_s11, %s1617_s11   ;;  %s1212_s10 = sphi %s1281_s10, %s1616_s10   ;;  %s1208_s30 = sphi %s1279_s30, %s1615_s30  }
   0x6   : > { %s1304_s15 = sadd.s32 1, %s1220_s12   ;;  %s229_s16 = sadd.s32 1, %s1216_s11 }
   0x7   : > { %s226_s17 = ssub.s32 %s1220_s12, %s1304_s15  ;;  %p239_p0 = scmp.ne.s32.totalorder %s1216_s11, %s1212_s10 }
   0x8   : > { %p227_p1 = scmp.eq.s32.totalorder %s226_s17, 0  ;;  %p240_p2 = scmp.eq.s32.totalorder %s1300_s13, 1 }
   0x9   : > { %p245_p3 = scmp.ne.s32.totalorder %s1212_s10, %s1208_s30  ;;  %p246_p4 = scmp.eq.s32.totalorder %s1059_s14, 1 }
   0xa   : > { %s1315_s18 = scalar_select %p227_p1, %s1216_s11, %s229_s16  }
   0xb   : > { %p1317_p5 = por %p240_p2, %p239_p0  ;;  %p1321_p6 = por %p246_p4, %p245_p3 }
   0xc   : > { %p1062_p7 = scmp.ge.s32.totalorder %s1220_s12, 1  ;;  %p293_p8 = scmp.lt.s32.totalorder %s1220_s12, 3 }
   0xe   : > { %p294_p9 = pnand %p1062_p7, %p293_p8 }
   0xf   : > { %p333_p10 = scmp.lt.s32.totalorder (!%p294_p9), %s1300_s13, 1  ;;  %s1613_s0 = sld [smem:[#allocation5_spill]] (!%p294_p9) }
  0x10   : > { %297 = sbr.rel (%p294_p9) target bundleno = 1224 (0x4c8), region = 52  ;;  %s1222_s26 = smov (!%p294_p9), 64  }
  0x11   : > { %s1224_s27 = smov (!%p294_p9), 4   ;;  %s1227_s14 = smov (!%p294_p9), 124  }
  0x12   : > { %s331_s29 = sand.u32 (!%p294_p9), 1, %s1212_s10   ;;  %s1078_s17 = sshll.u32 (!%p294_p9), %s1300_s13, 4 }
  0x13   : > { %s332_s23 = scalar_lea.vmem (!%p294_p9), [#allocation2], %s331_s29  ;;  %s964_s28 = scalar_lea.sflag (!%p294_p9), [#allocation3], %s331_s29 }
  0x14   : > { %s979_s24 = sshll.u32 (!%p294_p9), %s332_s23, 4  ;;  %s980_s24 = int_to_ptr.vmem [resolvable:$true] %s979_s24 }
  0x15   : > { %s1329_s21 = scalar_select %p333_p10, %s1300_s13, 1  ;;  %vm412_vm0 = vcmask 1048064   ;;  %vm351_vm1 = vcmask 523264   ;;  %vm497_vm2 = vcmask 7168   ;;  %vm502_vm3 = vcmask 15360  }
  0x16   : > { %v1223_v55 = vmov 0.0   ;;  %vm507_vm4 = vcmask 23552   ;;  %vm1225_vm5 = vmmov 0   ;;  %vm540_vm6 = vcmask 31744  }
  0x17   : > { %s1609_s22 = sshll.u32 %s1329_s21, 6  ;;  %1093 = vmatprep.subr.mxu0 %v1223_v55  ;;  %877 = vmatprep.mubr.f32.mxu1 %v1223_v55  ;;  %vm552_vm7 = vcmask 261120   ;;  %vm659_vm8 = vcmask 64512   ;;  %vm808_vm9 = vcmask 1043456  }
  0x18   : > { %s1337_s25 = scalar_lea.vmem %s1613_s0, %s1609_s22  ;;  %1101 = vmatprep.mubr.msk.f32.mxu0 %vm1225_vm5, %v1223_v55  ;;  %s1160_s22 = scalar_lea.vmem %s980_s24, 16 }
  0x19   : > { %v1340_v0 = vld [vmem:[%s1337_s25 + $0x38] sm:$0xff]  ;;  %v1343_v1 = vld [vmem:[%s1337_s25 + $0x30] sm:$0xff]  ;;  %v1350_v2 = vld [vmem:[%s1337_s25 + $0x20] sm:$0xff]  ;;  %p1161_p11 = scmp.ne.s32.totalorder %s980_s24, %s1160_s22  ;;  %s1228_s0 = smov [#allocation2]  }
  0x1a   : > { %463 = vrot.lane.b32.xlu1 %v1340_v0, %s1222_s26  ;;  %390 = vrot.lane.b32.xlu0 %v1343_v1, %s1222_s26  ;;  %v422_v3 = vsel %vm412_vm0, %v1343_v1, -inf  ;;  %v377_v4 = vsel %vm351_vm1, %v1343_v1, -inf  ;;  %v450_v5 = vsel %vm351_vm1, %v1340_v0, -inf  ;;  %v1361_v6 = vld [vmem:[%s1337_s25 + $0x28] sm:$0xff]  ;;  %v1364_v7 = vld [vmem:[%s1337_s25 + $0x10] sm:$0xff]  ;;  %v374_v8 = vsel %vm351_vm1, %v1350_v2, -inf }
  0x1b   : > { %v494_v9 = vsel %vm412_vm0, %v1340_v0, -inf  ;;  %v419_v10 = vsel %vm412_vm0, %v1350_v2, -inf  ;;  %v447_v11 = vsel %vm351_vm1, %v1361_v6, -inf  ;;  %v1379_v12 = vld [vmem:[%s1337_s25 + $0x18] sm:$0xff]  ;;  %v1382_v13 = vld [vmem:[%s1337_s25] sm:$0xff]  ;;  %v371_v14 = vsel %vm351_vm1, %v1364_v7, -inf  ;;  %p1162_p12 = pnand %p1161_p11, %p1317_p5 }
  0x1c   : > { %v491_v15 = vsel %vm412_vm0, %v1361_v6, -inf  ;;  %v416_v16 = vsel %vm412_vm0, %v1364_v7, -inf  ;;  %v444_v17 = vsel %vm351_vm1, %v1379_v12, -inf  ;;  %v368_v18 = vsel %vm351_vm1, %v1382_v13, -inf  ;;  %v1403_v21 = vld [vmem:[%s1337_s25 + $0x8] sm:$0xff] }
  0x1d   : > { %v413_v19 = vsel %vm412_vm0, %v1382_v13, -inf  ;;  %v488_v20 = vsel %vm412_vm0, %v1379_v12, -inf  ;;  %v441_v22 = vsel %vm351_vm1, %v1403_v21, -inf  ;;  %v361_v23 = vsel %vm351_vm1, %v1343_v1, 0.0  ;;  %p1163_p13 = pneg %p1162_p12 }
  0x1e   : > { %388 = vrot.lane.b32.xlu0 %v1350_v2, %s1222_s26  ;;  %v434_v26 = vsel %vm351_vm1, %v1340_v0, 0.0  ;;  %v358_v27 = vsel %vm351_vm1, %v1350_v2, 0.0  ;;  %v431_v33 = vsel %vm351_vm1, %v1361_v6, 0.0  ;;  %v355_v36 = vsel %vm351_vm1, %v1364_v7, 0.0 }
  0x1f   : > { %v485_v38 = vsel %vm412_vm0, %v1403_v21, -inf  ;;  %v428_v42 = vsel %vm351_vm1, %v1379_v12, 0.0  ;;  %v352_v43 = vsel %vm351_vm1, %v1382_v13, 0.0  ;;  %v425_v52 = vsel %vm351_vm1, %v1403_v21, 0.0 }
  0x3d   : > { %423 = vmax.xlane.f32.xlu0 %v422_v3 }
  0x3e   : > { %378 = vmax.xlane.f32.xlu1 %v377_v4 }
  0x42   : > { %451 = vmax.xlane.f32.xlu1 %v450_v5 }
  0x53   : > { %461 = vrot.lane.b32.xlu1 %v1361_v6, %s1222_s26  ;;  %386 = vrot.lane.b32.xlu0 %v1364_v7, %s1222_s26 }
  0x72   : > { %375 = vmax.xlane.f32.xlu0 %v374_v8 }
  0x76   : > { %495 = vmax.xlane.f32.xlu0 %v494_v9 }
  0x77   : > { %420 = vmax.xlane.f32.xlu1 %v419_v10 }
  0x7b   : > { %448 = vmax.xlane.f32.xlu1 %v447_v11 }
  0x8c   : > { %459 = vrot.lane.b32.xlu1 %v1379_v12, %s1222_s26  ;;  %384 = vrot.lane.b32.xlu0 %v1382_v13, %s1222_s26  ;;  %v391_v24 = vpop.permute.xlu0 %390  ;;  %v464_v29 = vpop.permute.xlu1 %463 }
  0x8d   : > { %v405_v25 = vsel %vm351_vm1, %v391_v24, 0.0  ;;  %v478_v32 = vsel %vm351_vm1, %v464_v29, 0.0  ;;  %v636_v29 = vld [vmem:[%s1604_s5 + $0x8] sm:$0xff] }
  0x90   : > { %v389_v28 = vpop.permute.xlu0 %388 }
  0x91   : > { %v402_v30 = vsel %vm351_vm1, %v389_v28, 0.0 }
  0xab   : > { %372 = vmax.xlane.f32.xlu0 %v371_v14 }
  0xaf   : > { %492 = vmax.xlane.f32.xlu0 %v491_v15 }
  0xb0   : > { %417 = vmax.xlane.f32.xlu1 %v416_v16 }
  0xb3   : > { %445 = vmax.xlane.f32.xlu0 %v444_v17 }
  0xb7   : > { %369 = vmax.xlane.f32.xlu0 %v368_v18 }
  0xbb   : > { %414 = vmax.xlane.f32.xlu0 %v413_v19 }
  0xbf   : > { %489 = vmax.xlane.f32.xlu0 %v488_v20 }
  0xc1   : > { %457 = vrot.lane.b32.xlu1 %v1403_v21, %s1222_s26 }
  0xc3   : > { %442 = vmax.xlane.f32.xlu0 %v441_v22 }
  0xc6   : > { %v424_v34 = vpop.xlane.xlu0 %423 }
  0xc7   : > { %362 = vadd.xlane.f32.xlu0 %v361_v23  ;;  %v379_v31 = vpop.xlane.xlu1 %378 }
  0xc8   : > { %v515_v56 = vsel %vm497_vm2, %v379_v31, %v424_v34  ;;  %v637_v34 = vld [vmem:[%s1604_s5 + $0x10] sm:$0xff] }
  0xca   : > { %v387_v37 = vpop.permute.xlu0 %386 }
  0xcb   : > { %406 = vadd.xlane.f32.xlu0 %v405_v25  ;;  %v452_v35 = vpop.xlane.xlu1 %451  ;;  %v399_v39 = vsel %vm351_vm1, %v387_v37, 0.0 }
  0xcc   : > { %v519_v57 = vsel %vm502_vm3, %v515_v56, %v452_v35 }
  0xcf   : > { %435 = vadd.xlane.f32.xlu0 %v434_v26  ;;  %v462_v40 = vpop.permute.xlu1 %461  ;;  %v546_v26 = vld [vmem:[%s1602_s3] sm:$0xff] }
  0xd0   : > { %v475_v41 = vsel %vm351_vm1, %v462_v40, 0.0 }
  0xd3   : > { %359 = vadd.xlane.f32.xlu0 %v358_v27  ;;  %v1226_v27 = vmov 0  }
  0xd4   : > { %1157 = vset.pattern.permute.xlu1 %v1226_v27  ;;  %1158 = vset.pattern.permute.xlu0 %v1226_v27 }
  0xd7   : > { %403 = vadd.xlane.f32.xlu0 %v402_v30 }
  0xdb   : > { %479 = vadd.xlane.f32.xlu0 %v478_v32 }
  0xdf   : > { %432 = vadd.xlane.f32.xlu0 %v431_v33 }
  0xe3   : > { %356 = vadd.xlane.f32.xlu0 %v355_v36 }
  0xe5   : > { %486 = vmax.xlane.f32.xlu1 %v485_v38 }
  0xe7   : > { %400 = vadd.xlane.f32.xlu0 %v399_v39 }
  0xe9   : > { %476 = vadd.xlane.f32.xlu1 %v475_v41 }
  0xeb   : > { %429 = vadd.xlane.f32.xlu0 %v428_v42 }
  0xed   : > { %353 = vadd.xlane.f32.xlu1 %v352_v43 }
  0xfb   : > { %v376_v44 = vpop.xlane.xlu0 %375 }
  0xff   : > { %v496_v45 = vpop.xlane.xlu0 %495 }
 0x100   : > { %v421_v46 = vpop.xlane.xlu1 %420  ;;  %v523_v58 = vsel %vm507_vm4, %v519_v57, %v496_v45 }
 0x101   : > { %v514_v47 = vsel %vm497_vm2, %v376_v44, %v421_v46 }
 0x103   : > { %v385_v48 = vpop.permute.xlu0 %384 }
 0x104   : > { %v449_v49 = vpop.xlane.xlu1 %448  ;;  %v396_v50 = vsel %vm351_vm1, %v385_v48, 0.0 }
 0x105   : > { %v518_v51 = vsel %vm502_vm3, %v514_v47, %v449_v49  ;;  %397 = vadd.xlane.f32.xlu0 %v396_v50 }
 0x108   : > { %v460_v53 = vpop.permute.xlu1 %459 }
 0x109   : > { %426 = vadd.xlane.f32.xlu0 %v425_v52  ;;  %v472_v54 = vsel %vm351_vm1, %v460_v53, 0.0 }
 0x10a   : > { %473 = vadd.xlane.f32.xlu1 %v472_v54 }
 0x11f   : > { %534 = vrot.lane.b32.xlu0 %v523_v58, %s1224_s27 }
 0x134   : > { %v373_v59 = vpop.xlane.xlu0 %372 }
 0x138   : > { %v493_v60 = vpop.xlane.xlu0 %492 }
 0x139   : > { %v418_v61 = vpop.xlane.xlu1 %417  ;;  %v522_v10 = vsel %vm507_vm4, %v518_v51, %v493_v60 }
 0x13a   : > { %v513_v14 = vsel %vm497_vm2, %v373_v59, %v418_v61 }
 0x13c   : > { %v446_v62 = vpop.xlane.xlu0 %445 }
 0x13d   : > { %v458_v63 = vpop.permute.xlu1 %457  ;;  %v517_v15 = vsel %vm502_vm3, %v513_v14, %v446_v62 }
 0x13e   : > { %v469_v3 = vsel %vm351_vm1, %v458_v63, 0.0 }
 0x13f   : > { %470 = vadd.xlane.f32.xlu1 %v469_v3 }
 0x140   : > { %v370_v4 = vpop.xlane.xlu0 %369 }
 0x144   : > { %v415_v5 = vpop.xlane.xlu0 %414 }
 0x145   : > { %v512_v31 = vsel %vm497_vm2, %v370_v4, %v415_v5 }
 0x148   : > { %v490_v8 = vpop.xlane.xlu0 %489 }
 0x149   : > { %v521_v16 = vsel %vm507_vm4, %v517_v15, %v490_v8 }
 0x14c   : > { %v443_v9 = vpop.xlane.xlu0 %442 }
 0x14d   : > { %v516_v35 = vsel %vm502_vm3, %v512_v31, %v443_v9 }
 0x150   : > { %v363_v11 = vpop.xlane.xlu0 %362  ;;  %532 = vrot.lane.b32.xlu1 %v522_v10, %s1224_s27 }
 0x151   : > { %v367_v50 = vmul.f32 0.015625, %v363_v11 }
 0x154   : > { %v407_v17 = vpop.xlane.xlu0 %406  ;;  %530 = vrot.lane.b32.xlu1 %v521_v16, %s1224_s27 }
 0x155   : > { %v411_v51 = vmul.f32 0.015625, %v407_v17 }
 0x157   : > { %v501_v58 = vsel %vm497_vm2, %v367_v50, %v411_v51 }
 0x158   : > { %v436_v18 = vpop.xlane.xlu0 %435  ;;  %549 = vperm.xlu1 %1157, %v546_v26  }
 0x159   : > { %v440_v52 = vmul.f32 0.015625, %v436_v18 }
 0x15b   : > { %v506_v60 = vsel %vm502_vm3, %v501_v58, %v440_v52 }
 0x15c   : > { %v360_v19 = vpop.xlane.xlu0 %359  ;;  %646 = vperm.xlu1 %1157, %v636_v29  }
 0x15d   : > { %v366_v20 = vmul.f32 0.015625, %v360_v19 }
 0x160   : > { %v404_v22 = vpop.xlane.xlu0 %403  ;;  %651 = vperm.xlu1 %1157, %v637_v34  }
 0x161   : > { %v410_v23 = vmul.f32 0.015625, %v404_v22 }
 0x163   : > { %v500_v24 = vsel %vm497_vm2, %v366_v20, %v410_v23  ;;  %v545_v20 = vld [vmem:[%s1601_s2] sm:$0xff] }
 0x164   : > { %v480_v25 = vpop.xlane.xlu0 %479  ;;  %v631_v23 = vld [vmem:[%s1603_s4] sm:$0xff] }
 0x165   : > { %v484_v53 = vmul.f32 0.015625, %v480_v25  ;;  %v638_v25 = vld [vmem:[%s1604_s5 + $0x18] sm:$0xff] }
 0x167   : > { %v1472_v62 = vsel %vm507_vm4, %v506_v60, %v484_v53 }
 0x168   : > { %v433_v28 = vpop.xlane.xlu0 %432 }
 0x169   : > { %v439_v30 = vmul.f32 0.015625, %v433_v28 }
 0x16b   : > { %v505_v32 = vsel %vm502_vm3, %v500_v24, %v439_v30  ;;  %v635_v24 = vld [vmem:[%s1604_s5] sm:$0xff] }
 0x16c   : > { %v357_v33 = vpop.xlane.xlu0 %356 }
 0x16d   : > { %v365_v37 = vmul.f32 0.015625, %v357_v33 }
 0x16e   : > { %v487_v36 = vpop.xlane.xlu1 %486 }
 0x16f   : > { %v520_v38 = vsel %vm507_vm4, %v516_v35, %v487_v36  ;;  %v632_v35 = vld [vmem:[%s1603_s4 + $0x8] sm:$0xff]  ;;  %v633_v36 = vld [vmem:[%s1603_s4 + $0x10] sm:$0xff] }
 0x170   : > { %528 = vrot.lane.b32.xlu0 %v520_v38, %s1224_s27  ;;  %v401_v39 = vpop.xlane.xlu0 %400  ;;  %v793_v38 = vld [vmem:[%s1600_s1] sm:$0xff]  ;;  %s977_s27 = scalar_lea.hbm %s1608_s9, %s1078_s17 }
 0x171   : > { %v409_v40 = vmul.f32 0.015625, %v401_v39 }
 0x172   : > { %v477_v45 = vpop.xlane.xlu1 %476 }
 0x173   : > { %v499_v41 = vsel %vm497_vm2, %v365_v37, %v409_v40  ;;  %v483_v4 = vmul.f32 0.015625, %v477_v45  ;;  %v634_v37 = vld [vmem:[%s1603_s4 + $0x18] sm:$0xff]  ;;  %v795_v40 = vcombine.high %v793_v38, %v793_v38 }
 0x174   : > { %v430_v42 = vpop.xlane.xlu0 %429  ;;  %641 = vperm.xlu0 %1158, %v635_v24  }
 0x175   : > { %v438_v43 = vmul.f32 0.015625, %v430_v42  ;;  %v1478_v10 = vsel %vm507_vm4, %v505_v32, %v483_v4  ;;  %1072 = vmatprep.subr.msk.mxu1 %vm808_vm9, %v795_v40 }
 0x176   : > { %v354_v46 = vpop.xlane.xlu1 %353  ;;  %1073 = vmatpush1.msk.msra.mxu1 %vm808_vm9, %v793_v38 }
 0x177   : > { %v504_v44 = vsel %vm502_vm3, %v499_v41, %v438_v43  ;;  %v364_v48 = vmul.f32 0.015625, %v354_v46 }
 0x178   : > { %656 = vperm.xlu0 %1158, %v638_v25  }
 0x18e   : > { %v398_v47 = vpop.xlane.xlu0 %397 }
 0x18f   : > { %v408_v49 = vmul.f32 0.015625, %v398_v47 }
 0x191   : > { %v498_v54 = vsel %vm497_vm2, %v364_v48, %v408_v49 }
 0x192   : > { %v427_v56 = vpop.xlane.xlu0 %426 }
 0x193   : > { %v437_v57 = vmul.f32 0.015625, %v427_v56  ;;  %v474_v3 = vpop.xlane.xlu1 %473 }
 0x194   : > { %v482_v8 = vmul.f32 0.015625, %v474_v3 }
 0x195   : > { %v503_v59 = vsel %vm502_vm3, %v498_v54, %v437_v57 }
 0x196   : > { %v535_v61 = vpop.permute.xlu0 %534  ;;  %v1484_v15 = vsel %vm507_vm4, %v504_v44, %v482_v8 }
 0x197   : > { %v544_v63 = vsel %vm540_vm6, %v1472_v62, %v535_v61 }
 0x198   : > { %1094 = vmatpush3.msra.mxu0 %v544_v63 }
 0x199   : > { %1095 = vmatprep.subr.mxu0 %v1223_v55 }
 0x1c8   : > { %v471_v5 = vpop.xlane.xlu1 %470 }
 0x1c9   : > { %v481_v17 = vmul.f32 0.015625, %v471_v5 }
 0x1cb   : > { %v1490_v19 = vsel %vm507_vm4, %v503_v59, %v481_v17 }
 0x1cc   : > { %v533_v9 = vpop.permute.xlu1 %532 }
 0x1cd   : > { %v543_v11 = vsel %vm540_vm6, %v1478_v10, %v533_v9 }
 0x1ce   : > { %1096 = vmatpush3.msra.mxu0 %v543_v11 }
 0x1cf   : > { %1097 = vmatprep.subr.mxu0 %v1223_v55 }
 0x1d0   : > { %v531_v14 = vpop.permute.xlu1 %530 }
 0x1d1   : > { %v542_v16 = vsel %vm540_vm6, %v1484_v15, %v531_v14 }
 0x1d2   : > { %1098 = vmatpush3.msra.mxu0 %v542_v16 }
 0x1d3   : > { %1099 = vmatprep.subr.mxu0 %v1223_v55 }
 0x1d4   : > { %v550_v26 = vpop.permute.xlu1 %549 }
 0x1d8   : > { %v647_v41 = vpop.permute.xlu1 %646 }
 0x1dc   : > { %v652_v49 = vpop.permute.xlu1 %651 }
 0x1e2   : > { %v529_v18 = vpop.permute.xlu0 %528 }
 0x1e3   : > { %v541_v22 = vsel %vm540_vm6, %v1490_v19, %v529_v18 }
 0x1e4   : > { %1100 = vmatpush3.msra.mxu0 %v541_v22 }
 0x1e5   : > { %1102 = vmatmul.mubr.msk.f32.vlgmr.msra.gmra.mxu0 %vm552_vm7, %v545_v20 }
 0x1e6   : > { %1106 = vmatprep.mubr.msk.f32.mxu0 %vm659_vm8, %v631_v23 }
 0x1ef   : > { %v642_v39 = vpop.permute.xlu0 %641 }
 0x1f3   : > { %v657_v46 = vpop.permute.xlu0 %656 }
 0x2a5   : > { %v622_v27 = vpop.f32.mrf.mxu0 }
 0x2a6   : > { %v623_v28 = vadd.f32 %v622_v27, %v550_v26 }
 0x2a7   : > { %v1103_v29 = vpop.f32.mrf.mxu0 }
 0x2a8   : > { %v626_v30 = vadd.f32 3.0, %v623_v28 }
 0x2aa   : > { %v627_v31 = vmax.f32 %v626_v30, 0.0 }
 0x2ac   : > { %v628_v32 = vmin.f32 %v627_v31, 6.0 }
 0x2ae   : > { %v629_v33 = vmul.f32 %v628_v32, %v623_v28 }
 0x2b0   : > { %v630_v34 = vmul.f32 0.16666667, %v629_v33 }
 0x2b2   : > { %1104 = vmatprep.subr.mxu0 %v630_v34 }
 0x2b3   : > { %1105 = vmatpush3.msra.mxu0 %v630_v34  ;;  %v939_v34 = vld [vmem:[%s1605_s6 + $0x8] sm:$0xff] }
 0x2b4   : > { %1107 = vmatmul.mubr.msk.f32.vlgmr.msra.gmra.mxu0 %vm659_vm8, %v632_v35 }
 0x2b5   : > { %1109 = vmatprep.mubr.msk.f32.mxu0 %vm659_vm8, %v633_v36 }
 0x2b8   : > { %1110 = vmatmul.mubr.msk.f32.gmra.mxu0 %vm659_vm8, %v634_v37 }
 0x374   : > { %v1108_v42 = vpop.f32.mrf.mxu0 }
 0x375   : > { %v744_v43 = vadd.f32 %v1108_v42, %v647_v41  ;;  %v941_v41 = vld [vmem:[%s1605_s6 + $0x18] sm:$0xff] }
 0x376   : > { %v738_v44 = vpop.f32.mrf.mxu0 }
 0x377   : > { %v739_v45 = vadd.f32 %v738_v44, %v642_v39  ;;  %763 = vrot.lane.b32.xlu0 %v744_v43, %s1227_s14 }
 0x378   : > { %v1111_v47 = vpop.f32.mrf.mxu0 }
 0x379   : > { %v754_v48 = vadd.f32 %v1111_v47, %v657_v46  ;;  %761 = vrot.lane.b32.xlu1 %v739_v45, %s1227_s14 }
 0x37a   : > { %v748_v50 = vpop.f32.mrf.mxu0 }
 0x37b   : > { %v749_v51 = vadd.f32 %v748_v50, %v652_v49  ;;  %767 = vrot.lane.b32.xlu0 %v754_v48, %s1227_s14 }
 0x37d   : > { %765 = vrot.lane.b32.xlu1 %v749_v51, %s1227_s14  ;;  %s1164_s14 = sshll.u32 %s1228_s0, 4  ;;  %s1165_s14 = int_to_ptr.vmem [resolvable:$false] %s1164_s14 }
 0x37e   : > { %s1166_s13 = scalar_lea.vmem %s1165_s14, 32  ;;  %p1167_p0 = scmp.lt.s32.totalorder %s980_s24, %s1165_s14 }
 0x37f   : > { %p1168_p1 = scmp.lt.s32.totalorder %s1166_s13, %s1160_s22 }
 0x381   : > { %p1169_p2 = por %p1168_p1, %p1167_p0 }
 0x383   : > { %p1170_p3 = pnand %p1169_p2, %p1163_p13 }
 0x3e9   : > { %v764_v52 = vpop.permute.xlu0 %763 }
 0x3ea   : > { %v774_v53 = vadd.f32 %v764_v52, %v744_v43  ;;  %v955_v52 = vld [vmem:[%s1606_s7] sm:$0x1] }
 0x3eb   : > { %v762_v54 = vpop.permute.xlu1 %761 }
 0x3ec   : > { %v778_v56 = vadd.f32 3.0, %v774_v53  ;;  %v773_v57 = vadd.f32 %v762_v54, %v739_v45 }
 0x3ed   : > { %v768_v58 = vpop.permute.xlu0 %767 }
 0x3ee   : > { %v782_v59 = vmax.f32 %v778_v56, 0.0  ;;  %v777_v60 = vadd.f32 3.0, %v773_v57  ;;  %v776_v61 = vadd.f32 %v768_v58, %v754_v48 }
 0x3ef   : > { %v766_v63 = vpop.permute.xlu1 %765 }
 0x3f0   : > { %v786_v3 = vmin.f32 %v782_v59, 6.0  ;;  %v781_v4 = vmax.f32 %v777_v60, 0.0  ;;  %v780_v5 = vadd.f32 3.0, %v776_v61  ;;  %v775_v8 = vadd.f32 %v766_v63, %v749_v51 }
 0x3f2   : > { %v790_v9 = vmul.f32 0.16666667, %v786_v3  ;;  %v785_v11 = vmin.f32 %v781_v4, 6.0  ;;  %v784_v14 = vmax.f32 %v780_v5, 0.0  ;;  %v779_v16 = vadd.f32 3.0, %v775_v8 }
 0x3f4   : > { %v789_v17 = vmul.f32 0.16666667, %v785_v11  ;;  %v788_v18 = vmin.f32 %v784_v14, 6.0  ;;  %v783_v20 = vmax.f32 %v779_v16, 0.0  ;;  %v919_v22 = vmul.f32 %v790_v9, %v1484_v15 }
 0x3f6   : > { %v792_v23 = vmul.f32 0.16666667, %v788_v18  ;;  %v787_v24 = vmin.f32 %v783_v20, 6.0  ;;  %1074 = vmatmul.mubr.msk.f32.vlgmr.msra.gmra.mxu1 %vm540_vm6, %v789_v17  ;;  %v925_v25 = vsel %vm540_vm6, %v919_v22, 0.0  ;;  %v918_v26 = vmul.f32 %v789_v17, %v1490_v19  ;;  %v938_v19 = vld [vmem:[%s1605_s6] sm:$0xff] }
 0x3f7   : > { %926 = vadd.xlane.f32.xlu0 %v925_v25  ;;  %883 = vmatprep.mubr.f32.mxu1 %v1223_v55 }
 0x3f8   : > { %v791_v27 = vmul.f32 0.16666667, %v787_v24  ;;  %v922_v28 = vsel %vm540_vm6, %v918_v26, 0.0  ;;  %v921_v29 = vmul.f32 %v792_v23, %v1472_v62 }
 0x3f9   : > { %923 = vadd.xlane.f32.xlu1 %v922_v28 }
 0x3fa   : > { %1075 = vmatmul.mubr.msk.f32.gmra.mxu1 %vm540_vm6, %v790_v9  ;;  %v920_v15 = vmul.f32 %v791_v27, %v1478_v10  ;;  %v931_v30 = vsel %vm540_vm6, %v921_v29, 0.0 }
 0x3fb   : > { %889 = vmatprep.mubr.f32.mxu1 %v1223_v55 }
 0x3fc   : > { %v928_v31 = vsel %vm540_vm6, %v920_v15, 0.0 }
 0x3fd   : > { %932 = vadd.xlane.f32.xlu1 %v931_v30  ;;  %929 = vadd.xlane.f32.xlu0 %v928_v31 }
 0x3fe   : > { %1076 = vmatmul.mubr.msk.f32.gmra.mxu1 %vm540_vm6, %v791_v27 }
 0x3ff   : > { %895 = vmatprep.mubr.f32.mxu1 %v1223_v55  ;;  %v940_v55 = vld [vmem:[%s1605_s6 + $0x10] sm:$0xff] }
 0x402   : > { %1077 = vmatmul.mubr.msk.f32.gmra.mxu1 %vm540_vm6, %v792_v23 }
 0x480   : > { %v927_v62 = vpop.xlane.xlu0 %926 }
 0x481   : > { %v935_v32 = vmul.f32 0.25, %v927_v62 }
 0x482   : > { %v924_v10 = vpop.xlane.xlu1 %923 }
 0x483   : > { %v934_v33 = vmul.f32 0.25, %v924_v10  ;;  %v943_v38 = vmul.f32 %v939_v34, %v935_v32 }
 0x485   : > { %v942_v35 = vmul.f32 %v938_v19, %v934_v33 }
 0x486   : > { %v930_v36 = vpop.xlane.xlu0 %929  ;;  %v933_v37 = vpop.xlane.xlu1 %932 }
 0x487   : > { %v936_v39 = vmul.f32 0.25, %v930_v36  ;;  %v937_v40 = vmul.f32 0.25, %v933_v37  ;;  %v946_v42 = vadd.f32 %v943_v38, %v942_v35 }
 0x489   : > { %v944_v43 = vmul.f32 %v940_v55, %v936_v39  ;;  %v945_v45 = vmul.f32 %v941_v41, %v937_v40 }
 0x48b   : > { %v947_v44 = vadd.f32 %v946_v42, %v944_v43 }
 0x48d   : > { %v948_v46 = vadd.f32 %v947_v44, %v945_v45 }
 0x48f   : > { %v949_v47 = vrot.slane %v948_v46, 4 }
 0x491   : > { %v950_v48 = vadd.f32 %v949_v47, %v948_v46 }
 0x493   : > { %v951_v49 = vrot.slane %v950_v48, 2 }
 0x495   : > { %v952_v50 = vadd.f32 %v951_v49, %v950_v48 }
 0x497   : > { %v953_v51 = vrot.slane %v952_v50, 1 }
 0x499   : > { %v954_v53 = vadd.f32 %v953_v51, %v952_v50 }
 0x49b   : > { %v956_v54 = vadd.f32 %v955_v52, %v954_v53 }
 0x49d   : > { %957 = vst [vmem:[%s332_s23] sm:$0x1] %v956_v54 }
 0x49e   : > { %1173 = shalt.err (!%p1170_p3)
}
 0x49f   : > { %s1174_s16 = scalar_lea.hbm %s977_s27, 16  ;;  %s1178_s23 = scalar_lea.hbm %s1608_s9, 32 }
 0x4a0   : > { %p1175_p4 = scmp.ne.s32.totalorder %s977_s27, %s1174_s16  ;;  %p1179_p9 = scmp.lt.s32.totalorder %s977_s27, %s1608_s9 }
 0x4a1   : > { %p1180_p10 = scmp.lt.s32.totalorder %s1178_s23, %s1174_s16 }
 0x4a2   : > { %p1176_p7 = pnand %p1175_p4, %p1317_p5 }
 0x4a3   : > { %p1181_p11 = por %p1180_p10, %p1179_p9 }
 0x4a4   : > { %p1177_p8 = pneg %p1176_p7 }
 0x4a6   : > { %p1182_p12 = pnand %p1181_p11, %p1177_p8 }
 0x4a8   : > { %1185 = shalt.err (!%p1182_p12)
}
 0x4a9   : > { %1112 = dma.vmem_to_hbm [thread:$0]  (%p1317_p5), %s980_s24, 16, %s977_s27, %s964_s28  }
 0x4aa   : > { %s1614_s0 = sshll.u32 %s1329_s21, 6 }
 0x4ab   : > { %s342_s13 = scalar_lea.vmem %s1607_s8, %s1614_s0 }
 0x4b6   : > { %v879_v56 = vpop.f32.mrf.mxu1 }
 0x4b7   : > { %v902_v57 = vmul.f32 %v879_v56, %v1382_v13 }
 0x4b8   : > { %v881_v58 = vpop.f32.mrf.mxu1 }
 0x4b9   : > { %910 = vst [vmem:[%s342_s13] sm:$0xff] %v902_v57  ;;  %v903_v59 = vmul.f32 %v881_v58, %v1403_v21 }
 0x4ba   : > { %v885_v60 = vpop.f32.mrf.mxu1 }
 0x4bb   : > { %911 = vst [vmem:[%s342_s13 + $0x8] sm:$0xff] %v903_v59  ;;  %v904_v61 = vmul.f32 %v885_v60, %v1364_v7 }
 0x4bc   : > { %v887_v63 = vpop.f32.mrf.mxu1 }
 0x4bd   : > { %912 = vst [vmem:[%s342_s13 + $0x10] sm:$0xff] %v904_v61  ;;  %v905_v3 = vmul.f32 %v887_v63, %v1379_v12 }
 0x4be   : > { %v891_v4 = vpop.f32.mrf.mxu1 }
 0x4bf   : > { %913 = vst [vmem:[%s342_s13 + $0x18] sm:$0xff] %v905_v3  ;;  %v906_v5 = vmul.f32 %v891_v4, %v1350_v2 }
 0x4c0   : > { %v893_v8 = vpop.f32.mrf.mxu1 }
 0x4c1   : > { %914 = vst [vmem:[%s342_s13 + $0x20] sm:$0xff] %v906_v5  ;;  %v907_v13 = vmul.f32 %v893_v8, %v1361_v6 }
 0x4c2   : > { %v897_v9 = vpop.f32.mrf.mxu1 }
 0x4c3   : > { %915 = vst [vmem:[%s342_s13 + $0x28] sm:$0xff] %v907_v13  ;;  %v908_v21 = vmul.f32 %v897_v9, %v1343_v1 }
 0x4c4   : > { %v899_v11 = vpop.f32.mrf.mxu1 }
 0x4c5   : > { %916 = vst [vmem:[%s342_s13 + $0x30] sm:$0xff] %v908_v21  ;;  %v909_v7 = vmul.f32 %v899_v11, %v1340_v0 }
 0x4c7   : > { %917 = vst [vmem:[%s342_s13 + $0x38] sm:$0xff] %v909_v7 }
 0x4c8 PF: > { %p1118_p5 = scmp.ge.s32.totalorder %s1220_s12, 2  ;;  %s999_s19 = sand.u32 1, %s1208_s30  }
 0x4c9   : > { %s1000_s21 = scalar_lea.sflag [#allocation3], %s999_s19 }
 0x4ca   : > { %p1115_p13 = pnand %p1118_p5, %p1321_p6 }
 0x4cc   : > { %p1116_p0 = pneg %p1115_p13 }
 0x4ce   : > { %1203 = dma.done.wait (%p1116_p0), %s1000_s21, 16  }
 0x4cf   : > { %1205 = vsyncadd (%p1116_p0), %s1000_s21, 4294967280  ;;  %p20_p1 = scmp.ge.s32.totalorder %s1304_s15, 4   ;;  %s1615_s30 = smov %s1212_s10 }
 0x4d0   : > { %s1616_s10 = smov %s1216_s11  ;;  %s1617_s11 = smov %s1315_s18 }
 0x4d1   : > { %s1618_s12 = smov %s1304_s15  ;;  %22 = sbr.rel (!%p20_p1) target bundleno = 5 (0x5), region = 99 }
 0x4d6   :  { %1004 = vsyncpa [#allocation3], 1 }
 0x4d7   :  { %1006 = vsyncpa [#allocation3 + $0x1], 1 }

</bundles_post_ra>
